<compile_context>
chip_gen: v6e
topology: v6e:2x2x1
jax: 0.10.0
libtpu: 0.0.40
codegen_flags: <defaults>
</compile_context>

<pallas_src>
import math
from functools import partial

import jax
import jax.numpy as jnp
from jax.experimental import pallas as pl
from jax.experimental.pallas import tpu as pltpu

_LOG_2PI = math.log(2.0 * math.pi)


def _leaky_relu(x, negative_slope=0.01):
    return jnp.where(x >= 0, x, negative_slope * x)


def _rnvp_kernel(x_ref, w1_ref, b1_ref, w2_ref, b2_ref,
                 z_ref, logpz_ref, logjac_ref,
                 *, d, k, flip):
    # Batch-in-lanes layout: every tensor here is (rows, TB) with TB in lanes.
    x = x_ref[...]                          # (d, TB)
    xa = x[:k, :]                           # rows of x[:, :k]
    xb = x[k:, :]                           # rows of x[:, k:]
    x1, x2 = (xb, xa) if flip else (xa, xb)

    # Fused layer 1 of sig_net and mu_net: (2H, k) @ (k, TB) -> (2H, TB)
    h = jnp.dot(w1_ref[...], x1, preferred_element_type=jnp.float32) + b1_ref[...]
    h = _leaky_relu(h)

    # Fused block-diagonal layer 2: (2*(d-k), 2H) @ (2H, TB) -> [sig ; mu]
    sm = jnp.dot(w2_ref[...], h, preferred_element_type=jnp.float32) + b2_ref[...]
    dk = d - k
    sig = sm[:dk, :]                        # (dk, TB)
    mu = sm[dk:, :]                         # (dk, TB)

    z2 = x2 * jnp.exp(sig) + mu

    # z_hat = cat([z1, z2]) written as two slice stores (no concatenate).
    lo, hi = (z2, x1) if flip else (x1, z2)
    z_ref[:k, :] = lo.astype(z_ref.dtype)
    z_ref[k:, :] = hi.astype(z_ref.dtype)

    # log N(z; 0, I) without re-materializing z_hat: sum of squares of the
    # identity half (x1) plus the transformed half (z2).  Sublane reduce of
    # <= d rows -> cheap XLU work, lane-dense (1, TB) outputs.
    sq = (jnp.sum(x1 * x1, axis=0, keepdims=True)
          + jnp.sum(z2 * z2, axis=0, keepdims=True))
    logpz_ref[...] = (-0.5 * d * _LOG_2PI - 0.5 * sq).astype(logpz_ref.dtype)
    logjac_ref[...] = jnp.sum(sig, axis=0, keepdims=True).astype(logjac_ref.dtype)


def rnvp_forward(x, params, *, k, flip=False, tile_b=512):
    """Pallas implementation of R_NVP.forward.

    x: (B, d) float32.  Returns (z_hat (B,d), log_pz (B,), log_jacob (B,)).
    """
    B, d = x.shape
    dk = d - k
    hidden = params["w1s"].shape[1]
    if flip:
        # The reference silently requires an even split for flip=True; fail loudly.
        assert dk == k, "flip=True requires an even split (d - k == k)"

    tile_b = min(tile_b, B)
    assert B % tile_b == 0, "batch must be divisible by tile_b"
    assert tile_b % 128 == 0 or tile_b == B, \
        "tile_b must be a multiple of 128 (lane-dense) or the full batch"

    # One-time packing: transpose weights, fuse sig/mu layer 1, block-diag layer 2.
    w1_t = jnp.concatenate([params["w1s"].T, params["w1m"].T], axis=0)        # (2H, k)
    b1_t = jnp.concatenate([params["b1s"], params["b1m"]], axis=1).T          # (2H, 1)
    zero = jnp.zeros((dk, hidden), jnp.float32)
    w2_t = jnp.concatenate(
        [jnp.concatenate([params["w2s"].T, zero], axis=1),
         jnp.concatenate([zero, params["w2m"].T], axis=1)], axis=0)           # (2dk, 2H)
    b2_t = jnp.concatenate([params["b2s"], params["b2m"]], axis=1).T          # (2dk, 1)

    x_t = x.T                                                                 # (d, B)

    grid = (B // tile_b,)
    kernel = partial(_rnvp_kernel, d=d, k=k, flip=flip)

    def const_map(i):
        return (0, 0)

    in_specs = [
        pl.BlockSpec((d, tile_b), lambda i: (0, i)),          # x^T, batch in lanes
        pl.BlockSpec((2 * hidden, k), const_map),             # fused W1^T
        pl.BlockSpec((2 * hidden, 1), const_map),             # fused b1
        pl.BlockSpec((2 * dk, 2 * hidden), const_map),        # block-diag W2^T
        pl.BlockSpec((2 * dk, 1), const_map),                 # fused b2
    ]
    out_specs = [
        pl.BlockSpec((d, tile_b), lambda i: (0, i)),          # z^T
        pl.BlockSpec((1, tile_b), lambda i: (0, i)),          # log_pz (lane-dense)
        pl.BlockSpec((1, tile_b), lambda i: (0, i)),          # log_jacob (lane-dense)
    ]
    out_shape = [
        jax.ShapeDtypeStruct((d, B), jnp.float32),
        jax.ShapeDtypeStruct((1, B), jnp.float32),
        jax.ShapeDtypeStruct((1, B), jnp.float32),
    ]

    # Advisory cost estimate for the XLA scheduler.
    flops = 2 * B * (2 * hidden) * k + 2 * B * (2 * dk) * (2 * hidden) + 8 * B * d
    bytes_accessed = 4 * (2 * B * d + 2 * B
                          + 2 * hidden * k + 2 * hidden
                          + 2 * dk * 2 * hidden + 2 * dk)
    cost = pl.CostEstimate(flops=flops, transcendentals=B * dk,
                           bytes_accessed=bytes_accessed)

    z_t, log_pz, log_jacob = pl.pallas_call(
        kernel,
        out_shape=out_shape,
        grid_spec=pltpu.PrefetchScalarGridSpec(
            num_scalar_prefetch=0,
            grid=grid,
            in_specs=in_specs,
            out_specs=out_specs,
        ),
        compiler_params=pltpu.CompilerParams(
            dimension_semantics=("parallel",)),
        cost_estimate=cost,
    )(x_t, w1_t, b1_t, w2_t, b2_t)

    return z_t.T, log_pz[0], log_jacob[0]


def init_params(key, d, k, hidden):
    """Deterministic PyTorch-style Linear init: U(-1/sqrt(fan_in), 1/sqrt(fan_in))."""
    dk = d - k
    keys = jax.random.split(key, 8)

    def lin(kw, kb, fan_in, fan_out):
        bound = 1.0 / math.sqrt(fan_in)
        w = jax.random.uniform(kw, (fan_in, fan_out), jnp.float32, -bound, bound)
        b = jax.random.uniform(kb, (1, fan_out), jnp.float32, -bound, bound)
        return w, b

    w1s, b1s = lin(keys[0], keys[1], k, hidden)
    w2s, b2s = lin(keys[2], keys[3], hidden, dk)
    w1m, b1m = lin(keys[4], keys[5], k, hidden)
    w2m, b2m = lin(keys[6], keys[7], hidden, dk)
    return dict(w1s=w1s, b1s=b1s, w2s=w2s, b2s=b2s,
                w1m=w1m, b1m=b1m, w2m=w2m, b2m=b2m)


def rnvp_reference(x, params, *, k, flip=False):
    """Pure-JAX reference for correctness checking."""
    d = x.shape[1]
    x1, x2 = x[:, :k], x[:, k:]
    if flip:
        x1, x2 = x2, x1
    hs = _leaky_relu(x1 @ params["w1s"] + params["b1s"])
    sig = hs @ params["w2s"] + params["b2s"]
    hm = _leaky_relu(x1 @ params["w1m"] + params["b1m"])
    mu = hm @ params["w2m"] + params["b2m"]
    z1, z2 = x1, x2 * jnp.exp(sig) + mu
    if flip:
        z1, z2 = z2, z1
    z_hat = jnp.concatenate([z1, z2], axis=-1)
    log_pz = -0.5 * d * _LOG_2PI - 0.5 * jnp.sum(z_hat ** 2, axis=-1)
    log_jacob = jnp.sum(sig, axis=-1)
    return z_hat, log_pz, log_jacob


if __name__ == "__main__":
    d, k, hidden = 4, 2, 32
    B = 512          # small demo batch; tile_b=128 -> 4 "parallel" grid steps
    tile_b = 128

    key = jax.random.PRNGKey(0)
    kx, kp = jax.random.split(key)
    x = jax.random.normal(kx, (B, d), dtype=jnp.float32)
    params = init_params(kp, d, k, hidden)

    ok = True
    for flip in (False, True):
        z_hat, log_pz, log_jacob = rnvp_forward(x, params, k=k, flip=flip,
                                                tile_b=tile_b)
        jax.block_until_ready((z_hat, log_pz, log_jacob))

        z_ref, lp_ref, lj_ref = rnvp_reference(x, params, k=k, flip=flip)
        ok &= bool(jnp.allclose(z_hat, z_ref, atol=1e-5, rtol=1e-5))
        ok &= bool(jnp.allclose(log_pz, lp_ref, atol=1e-5, rtol=1e-5))
        ok &= bool(jnp.allclose(log_jacob, lj_ref, atol=1e-5, rtol=1e-5))

    assert ok, "Pallas kernel does not match pure-JAX reference"
    print("KERNEL_OK")
</pallas_src>

<mosaic_0001>
module attributes {stable_mosaic.version = 11 : i64} {
  func.func @_rnvp_kernel(%arg0: i32, %arg1: memref<4x128xf32, #tpu.memory_space<vmem>>, %arg2: memref<64x2xf32, #tpu.memory_space<vmem>>, %arg3: memref<64x1xf32, #tpu.memory_space<vmem>>, %arg4: memref<4x64xf32, #tpu.memory_space<vmem>>, %arg5: memref<4x1xf32, #tpu.memory_space<vmem>>, %arg6: memref<4x128xf32, #tpu.memory_space<vmem>>, %arg7: memref<1x128xf32, #tpu.memory_space<vmem>>, %arg8: memref<1x128xf32, #tpu.memory_space<vmem>>) attributes {dimension_semantics = [#tpu.dimension_semantics<parallel>], iteration_bounds = array<i64: 4>, scalar_prefetch = 0 : i64, scratch_operands = 0 : i64, tpu.core_type = #tpu.core_type<tc>, window_params = [{transform_indices = @transform_0, window_bounds = array<i64: 4, 128>}, {pipeline_mode = #tpu.pipeline_mode<synchronous>, transform_indices = @transform_1, window_bounds = array<i64: 64, 2>}, {pipeline_mode = #tpu.pipeline_mode<synchronous>, transform_indices = @transform_2, window_bounds = array<i64: 64, 1>}, {pipeline_mode = #tpu.pipeline_mode<synchronous>, transform_indices = @transform_3, window_bounds = array<i64: 4, 64>}, {pipeline_mode = #tpu.pipeline_mode<synchronous>, transform_indices = @transform_4, window_bounds = array<i64: 4, 1>}, {transform_indices = @transform_5, window_bounds = array<i64: 4, 128>}, {transform_indices = @transform_6, window_bounds = array<i64: 1, 128>}, {transform_indices = @transform_7, window_bounds = array<i64: 1, 128>}]} {
    %c0 = arith.constant 0 : index
    %c0_0 = arith.constant 0 : index
    %0 = vector.load %arg1[%c0, %c0_0] : memref<4x128xf32, #tpu.memory_space<vmem>>, vector<4x128xf32>
    %1 = vector.extract_strided_slice %0 {offsets = [0, 0], sizes = [2, 128], strides = [1, 1]} : vector<4x128xf32> to vector<2x128xf32>
    %2 = vector.extract_strided_slice %0 {offsets = [2, 0], sizes = [2, 128], strides = [1, 1]} : vector<4x128xf32> to vector<2x128xf32>
    %c0_1 = arith.constant 0 : index
    %c0_2 = arith.constant 0 : index
    %3 = vector.load %arg2[%c0_1, %c0_2] : memref<64x2xf32, #tpu.memory_space<vmem>>, vector<64x2xf32>
    %cst = arith.constant dense<0.000000e+00> : vector<64x128xf32>
    %4 = tpu.matmul %3, %1, %cst {dimension_numbers = #tpu.dot_dimension_numbers<[1], [0], [0], [1], [0, 0, 1, 1], [], []>} : vector<64x2xf32>, vector<2x128xf32>, vector<64x128xf32> -> vector<64x128xf32>
    %c0_3 = arith.constant 0 : index
    %c0_4 = arith.constant 0 : index
    %5 = vector.load %arg3[%c0_3, %c0_4] : memref<64x1xf32, #tpu.memory_space<vmem>>, vector<64x1xf32>
    %6 = vector.broadcast %5 : vector<64x1xf32> to vector<64x128xf32>
    %7 = arith.addf %4, %6 : vector<64x128xf32>
    %cst_5 = arith.constant 0.000000e+00 : f32
    %8 = vector.broadcast %cst_5 : f32 to vector<64x128xf32>
    %9 = arith.cmpf oge, %7, %8 : vector<64x128xf32>
    %cst_6 = arith.constant 0.00999999977 : f32
    %10 = vector.broadcast %cst_6 : f32 to vector<64x128xf32>
    %11 = arith.mulf %10, %7 : vector<64x128xf32>
    %12 = arith.select %9, %7, %11 : vector<64x128xi1>, vector<64x128xf32>
    %c0_7 = arith.constant 0 : index
    %c0_8 = arith.constant 0 : index
    %13 = vector.load %arg4[%c0_7, %c0_8] : memref<4x64xf32, #tpu.memory_space<vmem>>, vector<4x64xf32>
    %cst_9 = arith.constant dense<0.000000e+00> : vector<4x128xf32>
    %14 = tpu.matmul %13, %12, %cst_9 {dimension_numbers = #tpu.dot_dimension_numbers<[1], [0], [0], [1], [0, 0, 1, 1], [], []>} : vector<4x64xf32>, vector<64x128xf32>, vector<4x128xf32> -> vector<4x128xf32>
    %c0_10 = arith.constant 0 : index
    %c0_11 = arith.constant 0 : index
    %15 = vector.load %arg5[%c0_10, %c0_11] : memref<4x1xf32, #tpu.memory_space<vmem>>, vector<4x1xf32>
    %16 = vector.broadcast %15 : vector<4x1xf32> to vector<4x128xf32>
    %17 = arith.addf %14, %16 : vector<4x128xf32>
    %18 = vector.extract_strided_slice %17 {offsets = [0, 0], sizes = [2, 128], strides = [1, 1]} : vector<4x128xf32> to vector<2x128xf32>
    %19 = vector.extract_strided_slice %17 {offsets = [2, 0], sizes = [2, 128], strides = [1, 1]} : vector<4x128xf32> to vector<2x128xf32>
    %20 = math.exp %18 : vector<2x128xf32>
    %21 = arith.mulf %2, %20 : vector<2x128xf32>
    %22 = arith.addf %21, %19 : vector<2x128xf32>
    %c0_12 = arith.constant 0 : index
    %c0_13 = arith.constant 0 : index
    %23 = vector.load %arg6[%c0_12, %c0_13] : memref<4x128xf32, #tpu.memory_space<vmem>>, vector<2x128xf32>
    tpu.vector_store %arg6[%c0_12, %c0_13], %1 {strides = array<i32>} : memref<4x128xf32, #tpu.memory_space<vmem>>, vector<2x128xf32>,
    %c2 = arith.constant 2 : index
    %c0_14 = arith.constant 0 : index
    %24 = vector.load %arg6[%c2, %c0_14] : memref<4x128xf32, #tpu.memory_space<vmem>>, vector<2x128xf32>
    tpu.vector_store %arg6[%c2, %c0_14], %22 {strides = array<i32>} : memref<4x128xf32, #tpu.memory_space<vmem>>, vector<2x128xf32>,
    %25 = arith.mulf %1, %1 : vector<2x128xf32>
    %cst_15 = arith.constant dense<0.000000e+00> : vector<128xf32>
    %26 = vector.multi_reduction <add>, %25, %cst_15 [0] : vector<2x128xf32> to vector<128xf32>
    %27 = vector.shape_cast %26 : vector<128xf32> to vector<1x128xf32>
    %28 = arith.mulf %22, %22 : vector<2x128xf32>
    %cst_16 = arith.constant dense<0.000000e+00> : vector<128xf32>
    %29 = vector.multi_reduction <add>, %28, %cst_16 [0] : vector<2x128xf32> to vector<128xf32>
    %30 = vector.shape_cast %29 : vector<128xf32> to vector<1x128xf32>
    %31 = arith.addf %27, %30 : vector<1x128xf32>
    %cst_17 = arith.constant 5.000000e-01 : f32
    %32 = vector.broadcast %cst_17 : f32 to vector<1x128xf32>
    %33 = arith.mulf %32, %31 : vector<1x128xf32>
    %cst_18 = arith.constant -3.67575407 : f32
    %34 = vector.broadcast %cst_18 : f32 to vector<1x128xf32>
    %35 = arith.subf %34, %33 : vector<1x128xf32>
    %c0_19 = arith.constant 0 : index
    %c0_20 = arith.constant 0 : index
    %36 = vector.load %arg7[%c0_19, %c0_20] : memref<1x128xf32, #tpu.memory_space<vmem>>, vector<1x128xf32>
    tpu.vector_store %arg7[%c0_19, %c0_20], %35 {strides = array<i32>} : memref<1x128xf32, #tpu.memory_space<vmem>>, vector<1x128xf32>,
    %cst_21 = arith.constant dense<0.000000e+00> : vector<128xf32>
    %37 = vector.multi_reduction <add>, %18, %cst_21 [0] : vector<2x128xf32> to vector<128xf32>
    %38 = vector.shape_cast %37 : vector<128xf32> to vector<1x128xf32>
    %c0_22 = arith.constant 0 : index
    %c0_23 = arith.constant 0 : index
    %39 = vector.load %arg8[%c0_22, %c0_23] : memref<1x128xf32, #tpu.memory_space<vmem>>, vector<1x128xf32>
    tpu.vector_store %arg8[%c0_22, %c0_23], %38 {strides = array<i32>} : memref<1x128xf32, #tpu.memory_space<vmem>>, vector<1x128xf32>,
    return
  }
  func.func @transform_0(%arg0: i32) -> (i32, i32) {
    %c0_i32 = arith.constant 0 : i32
    %c0_i32_0 = arith.constant 0 : i32
    return %c0_i32, %arg0 : i32, i32
  }
  func.func @transform_1(%arg0: i32) -> (i32, i32) {
    %c0_i32 = arith.constant 0 : i32
    %c0_i32_0 = arith.constant 0 : i32
    %c0_i32_1 = arith.constant 0 : i32
    return %c0_i32, %c0_i32_0 : i32, i32
  }
  func.func @transform_2(%arg0: i32) -> (i32, i32) {
    %c0_i32 = arith.constant 0 : i32
    %c0_i32_0 = arith.constant 0 : i32
    %c0_i32_1 = arith.constant 0 : i32
    return %c0_i32, %c0_i32_0 : i32, i32
  }
  func.func @transform_3(%arg0: i32) -> (i32, i32) {
    %c0_i32 = arith.constant 0 : i32
    %c0_i32_0 = arith.constant 0 : i32
    %c0_i32_1 = arith.constant 0 : i32
    return %c0_i32, %c0_i32_0 : i32, i32
  }
  func.func @transform_4(%arg0: i32) -> (i32, i32) {
    %c0_i32 = arith.constant 0 : i32
    %c0_i32_0 = arith.constant 0 : i32
    %c0_i32_1 = arith.constant 0 : i32
    return %c0_i32, %c0_i32_0 : i32, i32
  }
  func.func @transform_5(%arg0: i32) -> (i32, i32) {
    %c0_i32 = arith.constant 0 : i32
    %c0_i32_0 = arith.constant 0 : i32
    return %c0_i32, %arg0 : i32, i32
  }
  func.func @transform_6(%arg0: i32) -> (i32, i32) {
    %c0_i32 = arith.constant 0 : i32
    %c0_i32_0 = arith.constant 0 : i32
    return %c0_i32, %arg0 : i32, i32
  }
  func.func @transform_7(%arg0: i32) -> (i32, i32) {
    %c0_i32 = arith.constant 0 : i32
    %c0_i32_0 = arith.constant 0 : i32
    return %c0_i32, %arg0 : i32, i32
  }
}

</mosaic_0001>

<bundles_post_ra>
// kernel: tpu_custom_call.1
= control target key start
LH: loop header
LB: loop body
LE: loop exit
PB: predicated region body
PF: predicated region fallthrough
CT: control target
= control target key end

     0   :  { %13 = vsyncpa [#allocation3], 0  ;;  %s1336_s0 = inlined_call_operand.vmem [shape: f32[4,512], index: 0, kind: input, shape index: {}]   ;;  %s1337_s1 = inlined_call_operand.vmem [shape: f32[64,2], index: 1, kind: input, shape index: {}]   ;;  %s1338_s2 = inlined_call_operand.vmem [shape: f32[64,1], index: 2, kind: input, shape index: {}]   ;;  %s1339_s3 = inlined_call_operand.vmem [shape: f32[4,64], index: 3, kind: input, shape index: {}]   ;;  %s1340_s4 = inlined_call_operand.vmem [shape: f32[4,1], index: 4, kind: input, shape index: {}]   ;;  %s1341_s5 = inlined_call_operand.hbm [shape: f32[4,512], index: 5, kind: output, shape index: {0}]   ;;  %s1342_s6 = inlined_call_operand.hbm [shape: f32[1,512], index: 6, kind: output, shape index: {1}]   ;;  %s1343_s7 = inlined_call_operand.hbm [shape: f32[1,512], index: 7, kind: output, shape index: {2}]  }
   0x1   :  { %15 = vsyncpa [#allocation3 + $0x1], 0 }
   0x2   :  { %16 = vsyncpa [#allocation5], 0 }
   0x3   :  { %18 = vsyncpa [#allocation5 + $0x1], 0  ;;  %s1079_s24 = smov 0   ;;  %s1081_s25 = smov 0  }
   0x4   :  { %s1083_s26 = smov 0   ;;  %s1085_s27 = smov 0  }
   0x5 LB: > { %s1100_s28 = sadd.s32 4294967295, %s1031_s27   ;;  %s1344_s29 = sadd.s32 4294967294, %s1031_s27   ;;  %s1031_s27 = sphi %s1085_s27, %s1351_s27   ;;  %s1027_s26 = sphi %s1083_s26, %s1350_s26   ;;  %s1023_s25 = sphi %s1081_s25, %s1349_s25   ;;  %s1019_s24 = sphi %s1079_s24, %s1348_s24  }
   0x6   : > { %s1104_s30 = sadd.s32 1, %s1031_s27   ;;  %s141_s8 = sadd.s32 1, %s1027_s26 }
   0x7   : > { %s138_s9 = ssub.s32 %s1031_s27, %s1104_s30  ;;  %p151_p0 = scmp.ne.s32.totalorder %s1027_s26, %s1023_s25 }
   0x8   : > { %p139_p1 = scmp.eq.s32.totalorder %s138_s9, 0  ;;  %p152_p2 = scmp.eq.s32.totalorder %s1100_s28, 3 }
   0x9   : > { %p157_p3 = scmp.ne.s32.totalorder %s1023_s25, %s1019_s24  ;;  %p158_p4 = scmp.eq.s32.totalorder %s1344_s29, 3 }
   0xa   : > { %s1117_s10 = scalar_select %p139_p1, %s1027_s26, %s141_s8  }
   0xb   : > { %p1119_p5 = por %p152_p2, %p151_p0  ;;  %p1123_p6 = por %p158_p4, %p157_p3 }
   0xc   : > { %p789_p7 = scmp.ge.s32.totalorder %s1031_s27, 1  ;;  %p247_p8 = scmp.lt.s32.totalorder %s1031_s27, 5 }
   0xe   : > { %p248_p9 = pnand %p789_p7, %p247_p8 }
   0xf   : > { %p286_p10 = scmp.lt.s32.totalorder (!%p248_p9), %s1100_s28, 3  ;;  %s1212_s16 = sand.u32 (!%p248_p9), 1, %s1023_s25  }
  0x10   : > { %251 = sbr.rel (%p248_p9) target bundleno = 537 (0x219), region = 40  ;;  %s790_s17 = sshll.u32 (!%p248_p9), %s1212_s16, 2 }
  0x11   : > { %s285_s18 = scalar_lea.vmem (!%p248_p9), [#allocation6], %s1212_s16  ;;  %s803_s19 = sshll.u32 (!%p248_p9), %s1100_s28, 6 }
  0x12   : > { %s1228_s23 = scalar_lea.hbm (!%p248_p9), %s1341_s5, %s803_s19  ;;  %s627_s8 = scalar_lea.sflag (!%p248_p9), [#allocation3], %s1212_s16 }
  0x13   : > { %s1036_s13 = smov (!%p248_p9), [#allocation2]  }
  0x14   : > { %s919_s14 = sshll.u32 (!%p248_p9), %s1036_s13, 4  ;;  %s920_s14 = int_to_ptr.vmem [resolvable:$false] %s919_s14 }
  0x15   : > { %v291_v0 = vld [vmem:[%s1337_s1] sm:$0xff]  ;;  %vm347_vm0 = vcmask 15360   ;;  %s287_s15 = scalar_select %p286_p10, %s1100_s28, 3  ;;  %v1033_v1 = vmov 0   ;;  %v306_v2 = vld [vmem:[%s1338_s2 + $0x38] sm:$0xff]  ;;  %v304_v3 = vld [vmem:[%s1338_s2 + $0x28] sm:$0xff] }
  0x16   : > { %828 = vmatprep.mubr.msk.f32.mxu0 %vm347_vm0, %v291_v0  ;;  %911 = vset.pattern.permute.xlu0 %v1033_v1  ;;  %vm372_vm1 = vcmask 1041408   ;;  %v305_v4 = vld [vmem:[%s1338_s2 + $0x30] sm:$0xff]  ;;  %v303_v5 = vld [vmem:[%s1338_s2 + $0x20] sm:$0xff]  ;;  %v292_v7 = vld [vmem:[%s1337_s1 + $0x8] sm:$0xff]  ;;  %v1034_v19 = vmov 0.0   ;;  %vm1035_vm2 = vmmov 0  }
  0x17   : > { %912 = vset.pattern.permute.xlu1 %v1033_v1  ;;  %344 = vperm.xlu0 %911, %v306_v2   ;;  %s791_s20 = sshll.u32 %s287_s15, 2  ;;  %v293_v8 = vld [vmem:[%s1337_s1 + $0x10] sm:$0xff]  ;;  %v302_v9 = vld [vmem:[%s1338_s2 + $0x18] sm:$0xff]  ;;  %v295_v12 = vld [vmem:[%s1337_s1 + $0x20] sm:$0xff]  ;;  %vm512_vm11 = vcmask 523264   ;;  %s273_s15 = scalar_lea.vmem [#allocation2], %s790_s17 }
  0x18   : > { %334 = vperm.xlu1 %912, %v304_v3   ;;  %s289_s9 = scalar_lea.vmem %s1336_s0, %s791_s20  ;;  %v301_v10 = vld [vmem:[%s1338_s2 + $0x10] sm:$0xff]  ;;  %v294_v11 = vld [vmem:[%s1337_s1 + $0x18] sm:$0xff]  ;;  %v300_v13 = vld [vmem:[%s1338_s2 + $0x8] sm:$0xff]  ;;  %840 = vmatprep.subr.mxu1 %v1034_v19  ;;  %s648_s20 = sshll.u32 %s273_s15, 4  ;;  %s1230_s20 = int_to_ptr.vmem [resolvable:$true] %s648_s20 }
  0x19   : > { %v1150_v6 = vld [vmem:[%s289_s9] sm:$0xf]  ;;  %v296_v15 = vld [vmem:[%s1337_s1 + $0x28] sm:$0xff]  ;;  %v297_v16 = vld [vmem:[%s1337_s1 + $0x30] sm:$0xff]  ;;  %856 = vmatprep.mubr.msk.f32.mxu1 %vm1035_vm2, %v1034_v19  ;;  %s915_s9 = scalar_lea.vmem %s1230_s20, 64  ;;  %s921_s17 = scalar_lea.vmem %s920_s14, 128 }
  0x1a   : > { %826 = vmatprep.subr.msk.mxu0 %vm372_vm1, %v1150_v6  ;;  %v299_v14 = vld [vmem:[%s1338_s2] sm:$0xff]  ;;  %v298_v18 = vld [vmem:[%s1337_s1 + $0x38] sm:$0xff]  ;;  %593 = vst [vmem:[%s273_s15] sm:$0x3] %v1150_v6  ;;  %p916_p11 = scmp.ne.s32.totalorder %s1230_s20, %s915_s9  ;;  %p922_p0 = scmp.lt.s32.totalorder %s1230_s20, %s920_s14 }
  0x1b   : > { %339 = vperm.xlu0 %911, %v305_v4   ;;  %827 = vmatpush3.msk.msra.mxu0 %vm372_vm1, %v1150_v6  ;;  %v506_v17 = vld [vmem:[%s1340_s4] sm:$0xf]  ;;  %p923_p1 = scmp.lt.s32.totalorder %s921_s17, %s915_s9 }
  0x1c   : > { %329 = vperm.xlu1 %912, %v303_v5   ;;  %829 = vmatmul.mubr.msk.f32.vlgmr.msra.gmra.mxu0 %vm347_vm0, %v292_v7  ;;  %v505_v59 = vld [vmem:[%s1339_s3] sm:$0xf]  ;;  %p917_p12 = pnand %p916_p11, %p1119_p5 }
  0x1d   : > { %831 = vmatprep.mubr.msk.f32.mxu0 %vm347_vm0, %v293_v8  ;;  %v595_v8 = vmul.f32 %v1150_v6, %v1150_v6  ;;  %p924_p2 = por %p923_p1, %p922_p0 }
  0x1e   : > { %p918_p13 = pneg %p917_p12 }
  0x1f   : > { %324 = vperm.xlu0 %911, %v302_v9  }
  0x20   : > { %319 = vperm.xlu1 %912, %v301_v10   ;;  %832 = vmatmul.mubr.msk.f32.gmra.mxu0 %vm347_vm0, %v294_v11  ;;  %v596_v11 = vsel %vm372_vm1, %v595_v8, 0.0  ;;  %p925_p3 = pnand %p924_p2, %p918_p13 }
  0x21   : > { %834 = vmatprep.mubr.msk.f32.mxu0 %vm347_vm0, %v295_v12 }
  0x23   : > { %314 = vperm.xlu0 %911, %v300_v13   ;;  %v597_v13 = vrot.slane %v596_v11, 4 }
  0x24   : > { %309 = vperm.xlu1 %912, %v299_v14   ;;  %835 = vmatmul.mubr.msk.f32.gmra.mxu0 %vm347_vm0, %v296_v15 }
  0x25   : > { %837 = vmatprep.mubr.msk.f32.mxu0 %vm347_vm0, %v297_v16  ;;  %v598_v16 = vadd.f32 %v597_v13, %v596_v11 }
  0x27   : > { %509 = vperm.xlu0 %911, %v506_v17  }
  0x28   : > { %838 = vmatmul.mubr.msk.f32.gmra.mxu0 %vm347_vm0, %v298_v18 }
  0x92   : > { %v345_v20 = vpop.permute.xlu0 %344 }
  0x93   : > { %v335_v22 = vpop.permute.xlu1 %334 }
  0x96   : > { %v340_v25 = vpop.permute.xlu0 %339 }
  0x97   : > { %v330_v27 = vpop.permute.xlu1 %329 }
  0x9a   : > { %v325_v30 = vpop.permute.xlu0 %324 }
  0x9b   : > { %v320_v34 = vpop.permute.xlu1 %319 }
  0x9e   : > { %v315_v43 = vpop.permute.xlu0 %314 }
  0x9f   : > { %v310_v47 = vpop.permute.xlu1 %309 }
  0xa2   : > { %v510_v61 = vpop.permute.xlu0 %509 }
  0xdc   : > { %v830_v21 = vpop.f32.mrf.mxu0 }
  0xdd   : > { %v448_v48 = vadd.f32 %v830_v21, %v315_v43 }
  0xde   : > { %v442_v23 = vpop.f32.mrf.mxu0 }
  0xdf   : > { %v443_v51 = vadd.f32 %v442_v23, %v310_v47  ;;  %v490_v54 = vmul.f32 0.01, %v448_v48  ;;  %vm482_vm9 = vcmp.ge.f32.partialorder %v448_v48, 0.0 }
  0xe0   : > { %v833_v24 = vpop.f32.mrf.mxu0 }
  0xe1   : > { %v458_v39 = vadd.f32 %v833_v24, %v325_v30  ;;  %v489_v56 = vmul.f32 0.01, %v443_v51  ;;  %vm481_vm10 = vcmp.ge.f32.partialorder %v443_v51, 0.0  ;;  %v498_v58 = vsel %vm482_vm9, %v448_v48, %v490_v54 }
  0xe2   : > { %v452_v26 = vpop.f32.mrf.mxu0 }
  0xe3   : > { %v453_v44 = vadd.f32 %v452_v26, %v320_v34  ;;  %v492_v49 = vmul.f32 0.01, %v458_v39  ;;  %vm484_vm7 = vcmp.ge.f32.partialorder %v458_v39, 0.0  ;;  %v497_v60 = vsel %vm481_vm10, %v443_v51, %v489_v56 }
  0xe4   : > { %v836_v28 = vpop.f32.mrf.mxu0 }
  0xe5   : > { %v468_v32 = vadd.f32 %v836_v28, %v335_v22  ;;  %v491_v52 = vmul.f32 0.01, %v453_v44  ;;  %vm483_vm8 = vcmp.ge.f32.partialorder %v453_v44, 0.0  ;;  %v500_v55 = vsel %vm484_vm7, %v458_v39, %v492_v49 }
  0xe6   : > { %v462_v29 = vpop.f32.mrf.mxu0 }
  0xe7   : > { %v463_v36 = vadd.f32 %v462_v29, %v330_v27  ;;  %v494_v40 = vmul.f32 0.01, %v468_v32  ;;  %vm486_vm5 = vcmp.ge.f32.partialorder %v468_v32, 0.0  ;;  %v499_v57 = vsel %vm483_vm8, %v453_v44, %v491_v52 }
  0xe8   : > { %v839_v31 = vpop.f32.mrf.mxu0 }
  0xe9   : > { %v478_v33 = vadd.f32 %v839_v31, %v345_v20  ;;  %v493_v45 = vmul.f32 0.01, %v463_v36  ;;  %vm485_vm6 = vcmp.ge.f32.partialorder %v463_v36, 0.0  ;;  %v502_v50 = vsel %vm486_vm5, %v468_v32, %v494_v40 }
  0xea   : > { %v472_v35 = vpop.f32.mrf.mxu0 }
  0xeb   : > { %v473_v37 = vadd.f32 %v472_v35, %v340_v25  ;;  %vm488_vm3 = vcmp.ge.f32.partialorder %v478_v33, 0.0  ;;  %v496_v38 = vmul.f32 0.01, %v478_v33  ;;  %v501_v53 = vsel %vm485_vm6, %v463_v36, %v493_v45 }
  0xed   : > { %v495_v41 = vmul.f32 0.01, %v473_v37  ;;  %v504_v42 = vsel %vm488_vm3, %v478_v33, %v496_v38  ;;  %vm487_vm4 = vcmp.ge.f32.partialorder %v473_v37, 0.0 }
  0xee   : > { %841 = vmatpush3.msra.mxu1 %v504_v42 }
  0xef   : > { %842 = vmatprep.subr.mxu1 %v1034_v19  ;;  %v503_v46 = vsel %vm487_vm4, %v473_v37, %v495_v41 }
  0xf0   : > { %843 = vmatpush3.msra.mxu1 %v503_v46 }
  0xf1   : > { %844 = vmatprep.subr.mxu1 %v1034_v19 }
  0xf2   : > { %845 = vmatpush3.msra.mxu1 %v502_v50 }
  0xf3   : > { %846 = vmatprep.subr.mxu1 %v1034_v19 }
  0xf4   : > { %847 = vmatpush3.msra.mxu1 %v501_v53 }
  0xf5   : > { %848 = vmatprep.subr.mxu1 %v1034_v19 }
  0xf6   : > { %849 = vmatpush3.msra.mxu1 %v500_v55 }
  0xf7   : > { %850 = vmatprep.subr.mxu1 %v1034_v19 }
  0xf8   : > { %851 = vmatpush3.msra.mxu1 %v499_v57 }
  0xf9   : > { %852 = vmatprep.subr.mxu1 %v1034_v19 }
  0xfa   : > { %853 = vmatpush3.msra.mxu1 %v498_v58 }
  0xfb   : > { %854 = vmatprep.subr.mxu1 %v1034_v19  ;;  %v599_v19 = vrot.slane %v598_v16, 2 }
  0xfc   : > { %855 = vmatpush3.msra.mxu1 %v497_v60 }
  0xfd   : > { %857 = vmatmul.mubr.msk.f32.vlgmr.msra.gmra.mxu1 %vm512_vm11, %v505_v59 }
 0x1bd   : > { %v582_v62 = vpop.f32.mrf.mxu1 }
 0x1be   : > { %v583_v63 = vadd.f32 %v582_v62, %v510_v61 }
 0x1bf   : > { %v858_v0 = vpop.f32.mrf.mxu1 }
 0x1c0   : > { %v586_v1 = vmul.f32 1.442695, %v583_v63  ;;  %v618_v2 = vsel %vm372_vm1, %v583_v63, 0.0 }
 0x1c1   : > { %v619_v3 = vrot.slane %v618_v2, 4 }
 0x1c2   : > { %913 = vpow2.f32 %v586_v1 }
 0x1c3   : > { %v620_v4 = vadd.f32 %v619_v3, %v618_v2 }
 0x1c5   : > { %v621_v5 = vrot.slane %v620_v4, 2 }
 0x1c7   : > { %v622_v7 = vadd.f32 %v621_v5, %v620_v4 }
 0x1c9   : > { %v623_v9 = vrot.slane %v622_v7, 1 }
 0x1cb   : > { %v624_v10 = vadd.f32 %v623_v9, %v622_v7 }
 0x1cd   : > { %625 = vst [vmem:[%s285_s18] sm:$0x1] %v624_v10 }
 0x1cf   : > { %v914_v12 = vpop.eup %913 }
 0x1d0   : > { %v589_v14 = vrot.slane %v914_v12, 6 }
 0x1d2   : > { %v591_v15 = vmul.f32 %v589_v14, %v1150_v6 }
 0x1d4   : > { %v592_v17 = vadd.f32 %v591_v15, %v583_v63 }
 0x1d6   : > { %v603_v18 = vmul.f32 %v592_v17, %v592_v17  ;;  %594 = vst [vmem:[%s273_s15] sm:$0xc] %v592_v17 }
 0x1d7   : > { %928 = shalt.err (!%p925_p3)
}
 0x1d8   : > { %s929_s15 = scalar_lea.hbm %s1228_s23, 64  ;;  %s933_s22 = scalar_lea.hbm %s1341_s5, 256 }
 0x1d9   : > { %p930_p4 = scmp.ne.s32.totalorder %s1228_s23, %s929_s15  ;;  %p934_p9 = scmp.lt.s32.totalorder %s1228_s23, %s1341_s5 }
 0x1da   : > { %p935_p10 = scmp.lt.s32.totalorder %s933_s22, %s929_s15 }
 0x1db   : > { %p931_p7 = pnand %p930_p4, %p1119_p5 }
 0x1dc   : > { %p936_p11 = por %p935_p10, %p934_p9 }
 0x1dd   : > { %p932_p8 = pneg %p931_p7 }
 0x1df   : > { %p937_p12 = pnand %p936_p11, %p932_p8 }
 0x1e1   : > { %940 = shalt.err (!%p937_p12)
}
 0x1e2   : > { %859 = dma.vmem_to_hbm [thread:$0]  (%p1119_p5), %s1230_s20, 64, %s1228_s23, %s627_s8   ;;  %v605_v6 = vrot.slane %v603_v18, 2  ;;  %v600_v22 = vadd.f32 %v599_v19, %v598_v16 }
 0x1e3   : > { %s631_s29 = sand.u32 1, %s1100_s28   ;;  %s804_s9 = sshll.u32 %s1100_s28, 4 }
 0x1e4   : > { %v607_v20 = vsel %vm372_vm1, %v605_v6, 0.0  ;;  %v601_v24 = vrot.slane %v600_v22, 1  ;;  %s279_s14 = scalar_lea.vmem [#allocation4], %s1212_s16  ;;  %s674_s20 = sshll.u32 %s285_s18, 4  ;;  %s1271_s20 = int_to_ptr.vmem [resolvable:$true] %s674_s20 }
 0x1e5   : > { %v608_v21 = vrot.slane %v607_v20, 4  ;;  %s661_s17 = sshll.u32 %s279_s14, 4  ;;  %s1262_s15 = scalar_lea.hbm %s1342_s6, %s804_s9  ;;  %s1264_s17 = int_to_ptr.vmem [resolvable:$true] %s661_s17 }
 0x1e6   : > { %v602_v27 = vadd.f32 %v601_v24, %v600_v22  ;;  %s1269_s28 = scalar_lea.hbm %s1343_s7, %s804_s9  ;;  %s1273_s16 = scalar_lea.sflag [#allocation5], %s631_s29 }
 0x1e7   : > { %v609_v23 = vadd.f32 %v608_v21, %v607_v20  ;;  %s941_s18 = scalar_lea.vmem %s1264_s17, 16  ;;  %s1037_s22 = smov [#allocation4]  }
 0x1e8   : > { %p942_p13 = scmp.ne.s32.totalorder %s1264_s17, %s941_s18  ;;  %s945_s13 = sshll.u32 %s1037_s22, 4  ;;  %s946_s13 = int_to_ptr.vmem [resolvable:$false] %s945_s13 }
 0x1e9   : > { %v610_v25 = vrot.slane %v609_v23, 2  ;;  %s947_s23 = scalar_lea.vmem %s946_s13, 32  ;;  %p948_p2 = scmp.lt.s32.totalorder %s1264_s17, %s946_s13 }
 0x1ea   : > { %p943_p0 = pnand %p942_p13, %p1119_p5  ;;  %p949_p3 = scmp.lt.s32.totalorder %s947_s23, %s941_s18 }
 0x1eb   : > { %v611_v26 = vadd.f32 %v610_v25, %v609_v23 }
 0x1ec   : > { %p944_p1 = pneg %p943_p0  ;;  %p950_p4 = por %p949_p3, %p948_p2 }
 0x1ed   : > { %v612_v28 = vrot.slane %v611_v26, 1 }
 0x1ee   : > { %p951_p7 = pnand %p950_p4, %p944_p1 }
 0x1ef   : > { %v613_v29 = vadd.f32 %v612_v28, %v611_v26 }
 0x1f1   : > { %v614_v30 = vadd.f32 %v613_v29, %v602_v27 }
 0x1f3   : > { %v615_v31 = vmul.f32 0.5, %v614_v30 }
 0x1f5   : > { %v616_v32 = vsub.f32 -3.675754, %v615_v31 }
 0x1f7   : > { %617 = vst [vmem:[%s279_s14] sm:$0x1] %v616_v32 }
 0x1f8   : > { %954 = shalt.err (!%p951_p7)
}
 0x1f9   : > { %s955_s29 = scalar_lea.hbm %s1262_s15, 16  ;;  %s959_s8 = scalar_lea.hbm %s1342_s6, 64 }
 0x1fa   : > { %p956_p8 = scmp.ne.s32.totalorder %s1262_s15, %s955_s29  ;;  %p960_p11 = scmp.lt.s32.totalorder %s1262_s15, %s1342_s6 }
 0x1fb   : > { %p961_p12 = scmp.lt.s32.totalorder %s959_s8, %s955_s29 }
 0x1fc   : > { %p957_p9 = pnand %p956_p8, %p1119_p5 }
 0x1fd   : > { %p962_p13 = por %p961_p12, %p960_p11 }
 0x1fe   : > { %p958_p10 = pneg %p957_p9 }
 0x200   : > { %p963_p0 = pnand %p962_p13, %p958_p10 }
 0x202   : > { %966 = shalt.err (!%p963_p0)
}
 0x203   : > { %860 = dma.vmem_to_hbm [thread:$0]  (%p1119_p5), %s1264_s17, 16, %s1262_s15, %s1273_s16  }
 0x204   : > { %s967_s18 = scalar_lea.vmem %s1271_s20, 16  ;;  %s1038_s22 = smov [#allocation6]  }
 0x205   : > { %p968_p1 = scmp.ne.s32.totalorder %s1271_s20, %s967_s18  ;;  %s971_s13 = sshll.u32 %s1038_s22, 4  ;;  %s972_s13 = int_to_ptr.vmem [resolvable:$false] %s971_s13 }
 0x206   : > { %s973_s23 = scalar_lea.vmem %s972_s13, 32  ;;  %p974_p4 = scmp.lt.s32.totalorder %s1271_s20, %s972_s13 }
 0x207   : > { %p969_p2 = pnand %p968_p1, %p1119_p5  ;;  %p975_p7 = scmp.lt.s32.totalorder %s973_s23, %s967_s18 }
 0x209   : > { %p970_p3 = pneg %p969_p2  ;;  %p976_p8 = por %p975_p7, %p974_p4 }
 0x20b   : > { %p977_p9 = pnand %p976_p8, %p970_p3 }
 0x20d   : > { %980 = shalt.err (!%p977_p9)
}
 0x20e   : > { %s981_s29 = scalar_lea.hbm %s1269_s28, 16  ;;  %s985_s9 = scalar_lea.hbm %s1343_s7, 64 }
 0x20f   : > { %p982_p10 = scmp.ne.s32.totalorder %s1269_s28, %s981_s29  ;;  %p986_p13 = scmp.lt.s32.totalorder %s1269_s28, %s1343_s7 }
 0x210   : > { %p987_p0 = scmp.lt.s32.totalorder %s985_s9, %s981_s29 }
 0x211   : > { %p983_p11 = pnand %p982_p10, %p1119_p5 }
 0x212   : > { %p988_p1 = por %p987_p0, %p986_p13 }
 0x213   : > { %p984_p12 = pneg %p983_p11 }
 0x215   : > { %p989_p2 = pnand %p988_p1, %p984_p12 }
 0x217   : > { %992 = shalt.err (!%p989_p2)
}
 0x218   : > { %861 = dma.vmem_to_hbm [thread:$0]  (%p1119_p5), %s1271_s20, 16, %s1269_s28, %s1273_s16  }
 0x219 PF: > { %p875_p3 = scmp.ge.s32.totalorder %s1031_s27, 2  ;;  %s686_s19 = sand.u32 1, %s1019_s24  }
 0x21a   : > { %s687_s21 = scalar_lea.sflag [#allocation3], %s686_s19 }
 0x21b   : > { %p866_p4 = pnand %p875_p3, %p1123_p6 }
 0x21d   : > { %p867_p7 = pneg %p866_p4 }
 0x21f   : > { %1010 = dma.done.wait (%p867_p7), %s687_s21, 64  }
 0x220   : > { %1012 = vsyncadd (%p867_p7), %s687_s21, 4294967232  ;;  %s1347_s18 = sadd.s32 4294967294, %s1031_s27  }
 0x221   : > { %s695_s22 = sand.u32 1, %s1347_s18  }
 0x222   : > { %s696_s11 = scalar_lea.sflag [#allocation5], %s695_s22 }
 0x223   : > { %1014 = dma.done.wait (%p867_p7), %s696_s11, 32  }
 0x224   : > { %1016 = vsyncadd (%p867_p7), %s696_s11, 4294967264  ;;  %p21_p5 = scmp.ge.s32.totalorder %s1104_s30, 6   ;;  %s1348_s24 = smov %s1023_s25 }
 0x225   : > { %s1349_s25 = smov %s1027_s26  ;;  %s1350_s26 = smov %s1117_s10 }
 0x226   : > { %s1351_s27 = smov %s1104_s30  ;;  %23 = sbr.rel (!%p21_p5) target bundleno = 5 (0x5), region = 107 }
 0x22b   :  { %708 = vsyncpa [#allocation3], 1 }
 0x22c   :  { %710 = vsyncpa [#allocation3 + $0x1], 1 }
 0x22d   :  { %711 = vsyncpa [#allocation5], 1 }
 0x22e   :  { %713 = vsyncpa [#allocation5 + $0x1], 1 }

</bundles_post_ra>
